<compile_context>
chip_gen: v5e
topology: v5e:2x2
jax: 0.10.0
libtpu: 0.0.40
codegen_flags: <defaults>
</compile_context>

<pallas_src>
import functools

import jax
import jax.numpy as jnp
from jax import lax
from jax.experimental import pallas as pl
from jax.experimental.pallas import tpu as pltpu


def _attention_body(q_ref, k_ref, v_ref, mask_ref, wT_ref, b_ref, o_ref,
                    m_s, l_s, acc_s, *, scale, num_heads, head_dim,
                    seq_q, seq_k, is_causal):
    """One (batch, q-tile, kv-tile) grid step: all heads + fused projection."""
    qi = pl.program_id(1)
    ki = pl.program_id(2)
    n_kv = pl.num_programs(2)

    H, D = num_heads, head_dim
    tq = q_ref.shape[1]
    tk = k_ref.shape[1]

    @pl.when(ki == 0)
    def _():
        m_s[...] = jnp.full(m_s.shape, -jnp.inf, m_s.dtype)
        l_s[...] = jnp.zeros(l_s.shape, l_s.dtype)
        acc_s[...] = jnp.zeros(acc_s.shape, acc_s.dtype)

    q = q_ref[0]          # (tq, H*D), native input dtype (bf16-ready)
    k = k_ref[0]          # (tk, H*D)
    v = v_ref[0]          # (tk, H*D)

    neg_max = -jnp.finfo(jnp.float32).max
    if is_causal:
        # Causal mask generated in-kernel: allow col <= row + (M - N).
        row = lax.broadcasted_iota(jnp.int32, (tq, tk), 0) + qi * tq
        col = lax.broadcasted_iota(jnp.int32, (tq, tk), 1) + ki * tk
        allow = col <= row + (seq_k - seq_q)
    elif mask_ref is not None:
        allow = mask_ref[0] != 0          # (tq, tk) bool (int8 in HBM)
    else:
        allow = None

    contract_d = (((1,), (1,)), ((), ()))   # 'n d, m d -> n m' (no transpose)

    for h in range(H):                       # static unroll over heads
        sl = slice(h * D, (h + 1) * D)
        q_h, k_h, v_h = q[:, sl], k[:, sl], v[:, sl]

        sim = lax.dot_general(q_h, k_h, contract_d,
                              preferred_element_type=jnp.float32) * scale
        if allow is not None:
            sim = jnp.where(allow, sim, neg_max)

        # Online softmax (fp32) over the KV grid axis.
        m_prev = m_s[h]                      # (tq, 1)
        m_new = jnp.maximum(m_prev, jnp.max(sim, axis=-1, keepdims=True))
        alpha = jnp.exp(m_prev - m_new)
        p = jnp.exp(sim - m_new)             # (tq, tk) f32
        l_s[h] = alpha * l_s[h] + jnp.sum(p, axis=-1, keepdims=True)
        m_s[h] = m_new
        acc_s[:, sl] = alpha * acc_s[:, sl] + jnp.dot(
            p.astype(v_h.dtype), v_h, preferred_element_type=jnp.float32)

    @pl.when(ki == n_kv - 1)
    def _():
        # Per-head normalization: EUP approx reciprocal + 1 Newton step.
        for h in range(H):
            sl = slice(h * D, (h + 1) * D)
            l_h = l_s[h]
            r = pl.reciprocal(l_h, approx=True)
            r = r * (2.0 - l_h * r)          # refine to ~f32 accuracy
            acc_s[:, sl] = acc_s[:, sl] * r
        # Single wide fused output projection: (tq, H*D) @ (H*D, out_f) + bias.
        out = jnp.dot(acc_s[...].astype(wT_ref.dtype), wT_ref[...],
                      preferred_element_type=jnp.float32)
        o_ref[0] = (out + b_ref[...].astype(jnp.float32)).astype(o_ref.dtype)


def _kernel_no_mask(q_ref, k_ref, v_ref, wT_ref, b_ref, o_ref,
                    m_s, l_s, acc_s, **kw):
    _attention_body(q_ref, k_ref, v_ref, None, wT_ref, b_ref, o_ref,
                    m_s, l_s, acc_s, **kw)


def _kernel_with_mask(q_ref, k_ref, v_ref, mask_ref, wT_ref, b_ref, o_ref,
                      m_s, l_s, acc_s, **kw):
    _attention_body(q_ref, k_ref, v_ref, mask_ref, wT_ref, b_ref, o_ref,
                    m_s, l_s, acc_s, **kw)


def _pick_tile(dim, cap, granule):
    """Largest divisor of `dim` that is <= cap and a multiple of `granule`;
    falls back to the full dim (always legal as a block dim)."""
    if dim <= cap:
        return dim
    for t in range(cap, 0, -1):
        if dim % t == 0 and t % granule == 0:
            return t
    return dim


def attention_base_forward(q, k, v, w, b, *, num_heads, head_features,
                           mask=None, is_causal=False,
                           q_tile_cap=512, kv_tile_cap=1024):
    """q, k, v: (B, N|M, H*D).  w: (out_f, H*D), b: (out_f,) from nn.Linear."""
    B, N, mid = q.shape
    M = k.shape[1]
    H, D = num_heads, head_features
    assert mid == H * D
    out_f = w.shape[0]
    scale = float(head_features) ** (-0.5)

    tq = _pick_tile(N, q_tile_cap, 8)       # sublane granule
    tk = _pick_tile(M, kv_tile_cap, 128)    # lane granule (mask last dim)
    grid = (B, N // tq, M // tk)

    wT = w.T                                # (H*D, out_f); only weight transposed
    bias = b.reshape(1, out_f)

    use_causal = is_causal and mask is None
    kw = dict(scale=scale, num_heads=H, head_dim=D,
              seq_q=N, seq_k=M, is_causal=use_causal)

    in_specs = [
        pl.BlockSpec((1, tq, mid), lambda bb, qi, ki: (bb, qi, 0)),   # q
        pl.BlockSpec((1, tk, mid), lambda bb, qi, ki: (bb, ki, 0)),   # k
        pl.BlockSpec((1, tk, mid), lambda bb, qi, ki: (bb, ki, 0)),   # v
    ]
    inputs = [q, k, v]

    if mask is not None:
        m = jnp.asarray(mask)
        if m.ndim == 2:                      # (N, M): keep un-broadcast over B
            m = m.reshape(1, N, M)
            mask_idx = lambda bb, qi, ki: (0, qi, ki)
        else:                                # (B, N, M)
            mask_idx = lambda bb, qi, ki: (bb, qi, ki)
        m = (m != 0).astype(jnp.int8)        # bool semantics, 1 byte / element
        in_specs.append(pl.BlockSpec((1, tq, tk), mask_idx))
        inputs.append(m)
        kernel = functools.partial(_kernel_with_mask, **kw)
    else:
        kernel = functools.partial(_kernel_no_mask, **kw)

    in_specs += [
        pl.BlockSpec((mid, out_f), lambda bb, qi, ki: (0, 0)),        # W^T
        pl.BlockSpec((1, out_f), lambda bb, qi, ki: (0, 0)),          # bias
    ]
    inputs += [wT, bias]

    grid_spec = pltpu.PrefetchScalarGridSpec(
        num_scalar_prefetch=0,
        grid=grid,
        in_specs=in_specs,
        out_specs=pl.BlockSpec((1, tq, out_f), lambda bb, qi, ki: (bb, qi, 0)),
        scratch_shapes=[
            pltpu.VMEM((H, tq, 1), jnp.float32),    # running max (per head)
            pltpu.VMEM((H, tq, 1), jnp.float32),    # running sum (per head)
            pltpu.VMEM((tq, mid), jnp.float32),     # attention out, all heads
        ],
    )

    return pl.pallas_call(
        kernel,
        out_shape=jax.ShapeDtypeStruct((B, N, out_f), q.dtype),
        grid_spec=grid_spec,
        compiler_params=pltpu.CompilerParams(
            dimension_semantics=("parallel", "parallel", "arbitrary"),
            vmem_limit_bytes=64 * 1024 * 1024),
    )(*inputs)


def attention_base_reference(q, k, v, w, b, *, num_heads, head_features,
                             mask=None, is_causal=False):
    B, N, _ = q.shape
    M = k.shape[1]
    H, D = num_heads, head_features
    scale = head_features ** (-0.5)

    def sh(x, L):
        return x.reshape(B, L, H, D).transpose(0, 2, 1, 3)

    qh, kh, vh = sh(q, N), sh(k, M), sh(v, M)
    sim = jnp.einsum('bhnd,bhmd->bhnm', qh, kh) * scale
    if mask is None and is_causal:
        row = jnp.arange(N)[:, None]
        col = jnp.arange(M)[None, :]
        mask = jnp.broadcast_to(col <= row + (M - N), (B, N, M))
    if mask is not None:
        m = jnp.asarray(mask).astype(bool)
        if m.ndim == 2:
            m = jnp.broadcast_to(m, (B, N, M))
        sim = jnp.where(m[:, None, :, :], sim, -jnp.finfo(jnp.float32).max)
    attn = jax.nn.softmax(sim.astype(jnp.float32), axis=-1)
    out = jnp.einsum('bhnm,bhmd->bhnd', attn, vh)
    out = out.transpose(0, 2, 1, 3).reshape(B, N, H * D)
    return out @ w.T + b


if __name__ == "__main__":
    # Module config (synthetic, deterministic init)
    features = 32
    head_features = 16
    num_heads = 2
    mid_features = head_features * num_heads   # 32
    out_features = features                    # default(out_features, features)

    B, N = 2, 8

    key = jax.random.PRNGKey(0)
    kq, kk, kv, kw_, kb = jax.random.split(key, 5)
    q = jax.random.normal(kq, (B, N, mid_features), jnp.float32)
    k = jax.random.normal(kk, (B, N, mid_features), jnp.float32)
    v = jax.random.normal(kv, (B, N, mid_features), jnp.float32)

    # nn.Linear(mid_features, out_features) parameters (deterministic init)
    bound = 1.0 / (mid_features ** 0.5)
    w = jax.random.uniform(kw_, (out_features, mid_features), jnp.float32,
                           -bound, bound)
    b = jax.random.uniform(kb, (out_features,), jnp.float32, -bound, bound)

    tol = dict(atol=1e-3, rtol=1e-3)

    # causal path (mask generated in-kernel, nothing materialized in HBM)
    out = jax.block_until_ready(
        attention_base_forward(q, k, v, w, b, num_heads=num_heads,
                               head_features=head_features, is_causal=True))
    ref = attention_base_reference(q, k, v, w, b, num_heads=num_heads,
                                   head_features=head_features, is_causal=True)
    assert out.shape == (B, N, out_features)
    assert jnp.allclose(out, ref, **tol), "causal mismatch vs reference"

    # unmasked path
    out2 = jax.block_until_ready(
        attention_base_forward(q, k, v, w, b, num_heads=num_heads,
                               head_features=head_features, is_causal=False))
    ref2 = attention_base_reference(q, k, v, w, b, num_heads=num_heads,
                                    head_features=head_features,
                                    is_causal=False)
    assert jnp.allclose(out2, ref2, **tol), "unmasked mismatch vs reference"

    # user-supplied 2-D bool mask path (passed as (1, N, M) int8, never
    # broadcast over batch)
    user_mask = (jnp.arange(N)[None, :] % 2 == 0) | jnp.eye(N, dtype=bool)
    out3 = jax.block_until_ready(
        attention_base_forward(q, k, v, w, b, num_heads=num_heads,
                               head_features=head_features, mask=user_mask))
    ref3 = attention_base_reference(q, k, v, w, b, num_heads=num_heads,
                                    head_features=head_features,
                                    mask=user_mask)
    assert jnp.allclose(out3, ref3, **tol), "user-mask mismatch vs reference"

    print("KERNEL_OK")
</pallas_src>

<mosaic_0001>
module attributes {stable_mosaic.version = 11 : i64} {
  func.func @_kernel_no_mask(%arg0: i32, %arg1: i32, %arg2: i32, %arg3: memref<1x8x32xf32, #tpu.memory_space<vmem>>, %arg4: memref<1x8x32xf32, #tpu.memory_space<vmem>>, %arg5: memref<1x8x32xf32, #tpu.memory_space<vmem>>, %arg6: memref<32x32xf32, #tpu.memory_space<vmem>>, %arg7: memref<1x32xf32, #tpu.memory_space<vmem>>, %arg8: memref<1x8x32xf32, #tpu.memory_space<vmem>>, %arg9: memref<2x8x1xf32, #tpu.memory_space<vmem>>, %arg10: memref<2x8x1xf32, #tpu.memory_space<vmem>>, %arg11: memref<8x32xf32, #tpu.memory_space<vmem>>) attributes {dimension_semantics = [#tpu.dimension_semantics<parallel>, #tpu.dimension_semantics<parallel>, #tpu.dimension_semantics<arbitrary>], iteration_bounds = array<i64: 2, 1, 1>, scalar_prefetch = 0 : i64, scratch_operands = 3 : i64, tpu.core_type = #tpu.core_type<tc>, window_params = [{transform_indices = @transform_0, window_bounds = array<i64: 1, 8, 32>}, {transform_indices = @transform_1, window_bounds = array<i64: 1, 8, 32>}, {transform_indices = @transform_2, window_bounds = array<i64: 1, 8, 32>}, {pipeline_mode = #tpu.pipeline_mode<synchronous>, transform_indices = @transform_3, window_bounds = array<i64: 32, 32>}, {pipeline_mode = #tpu.pipeline_mode<synchronous>, transform_indices = @transform_4, window_bounds = array<i64: 1, 32>}, {transform_indices = @transform_5, window_bounds = array<i64: 1, 8, 32>}]} {
    %c0_i32 = arith.constant 0 : i32
    %0 = arith.cmpi eq, %arg2, %c0_i32 : i32
    %1 = arith.extui %0 : i1 to i32
    %c0_i32_0 = arith.constant 0 : i32
    %2 = arith.cmpi ne, %1, %c0_i32_0 : i32
    scf.if %2 {
      %cst_54 = arith.constant 0xFF800000 : f32
      %95 = vector.broadcast %cst_54 : f32 to vector<2x8x1xf32>
      %c0_55 = arith.constant 0 : index
      %c0_56 = arith.constant 0 : index
      %c0_57 = arith.constant 0 : index
      %96 = vector.load %arg9[%c0_55, %c0_56, %c0_57] : memref<2x8x1xf32, #tpu.memory_space<vmem>>, vector<2x8x1xf32>
      tpu.vector_store %arg9[%c0_55, %c0_56, %c0_57], %95 {strides = array<i32>} : memref<2x8x1xf32, #tpu.memory_space<vmem>>, vector<2x8x1xf32>,
      %cst_58 = arith.constant 0.000000e+00 : f32
      %97 = vector.broadcast %cst_58 : f32 to vector<2x8x1xf32>
      %c0_59 = arith.constant 0 : index
      %c0_60 = arith.constant 0 : index
      %c0_61 = arith.constant 0 : index
      %98 = vector.load %arg10[%c0_59, %c0_60, %c0_61] : memref<2x8x1xf32, #tpu.memory_space<vmem>>, vector<2x8x1xf32>
      tpu.vector_store %arg10[%c0_59, %c0_60, %c0_61], %97 {strides = array<i32>} : memref<2x8x1xf32, #tpu.memory_space<vmem>>, vector<2x8x1xf32>,
      %cst_62 = arith.constant 0.000000e+00 : f32
      %99 = vector.broadcast %cst_62 : f32 to vector<8x32xf32>
      %c0_63 = arith.constant 0 : index
      %c0_64 = arith.constant 0 : index
      %100 = vector.load %arg11[%c0_63, %c0_64] : memref<8x32xf32, #tpu.memory_space<vmem>>, vector<8x32xf32>
      tpu.vector_store %arg11[%c0_63, %c0_64], %99 {strides = array<i32>} : memref<8x32xf32, #tpu.memory_space<vmem>>, vector<8x32xf32>,
    } else {
    }
    %c0 = arith.constant 0 : index
    %c0_1 = arith.constant 0 : index
    %c0_2 = arith.constant 0 : index
    %3 = vector.load %arg3[%c0, %c0_1, %c0_2] : memref<1x8x32xf32, #tpu.memory_space<vmem>>, vector<1x8x32xf32>
    %4 = vector.shape_cast %3 : vector<1x8x32xf32> to vector<8x32xf32>
    %c0_3 = arith.constant 0 : index
    %c0_4 = arith.constant 0 : index
    %c0_5 = arith.constant 0 : index
    %5 = vector.load %arg4[%c0_3, %c0_4, %c0_5] : memref<1x8x32xf32, #tpu.memory_space<vmem>>, vector<1x8x32xf32>
    %6 = vector.shape_cast %5 : vector<1x8x32xf32> to vector<8x32xf32>
    %c0_6 = arith.constant 0 : index
    %c0_7 = arith.constant 0 : index
    %c0_8 = arith.constant 0 : index
    %7 = vector.load %arg5[%c0_6, %c0_7, %c0_8] : memref<1x8x32xf32, #tpu.memory_space<vmem>>, vector<1x8x32xf32>
    %8 = vector.shape_cast %7 : vector<1x8x32xf32> to vector<8x32xf32>
    %9 = tpu.iota {dimensions = array<i32: 0>} : vector<8x8xi32>
    %c8_i32 = arith.constant 8 : i32
    %10 = arith.muli %arg1, %c8_i32 : i32
    %11 = vector.broadcast %10 : i32 to vector<8x8xi32>
    %12 = arith.addi %9, %11 : vector<8x8xi32>
    %13 = tpu.iota {dimensions = array<i32: 1>} : vector<8x8xi32>
    %c8_i32_9 = arith.constant 8 : i32
    %14 = arith.muli %arg2, %c8_i32_9 : i32
    %15 = vector.broadcast %14 : i32 to vector<8x8xi32>
    %16 = arith.addi %13, %15 : vector<8x8xi32>
    %c0_i32_10 = arith.constant 0 : i32
    %17 = vector.broadcast %c0_i32_10 : i32 to vector<8x8xi32>
    %18 = arith.addi %12, %17 : vector<8x8xi32>
    %19 = arith.cmpi sle, %16, %18 : vector<8x8xi32>
    %20 = vector.extract_strided_slice %4 {offsets = [0, 0], sizes = [8, 16], strides = [1, 1]} : vector<8x32xf32> to vector<8x16xf32>
    %21 = vector.extract_strided_slice %6 {offsets = [0, 0], sizes = [8, 16], strides = [1, 1]} : vector<8x32xf32> to vector<8x16xf32>
    %22 = vector.extract_strided_slice %8 {offsets = [0, 0], sizes = [8, 16], strides = [1, 1]} : vector<8x32xf32> to vector<8x16xf32>
    %cst = arith.constant dense<0.000000e+00> : vector<8x8xf32>
    %23 = tpu.matmul %20, %21, %cst {dimension_numbers = #tpu.dot_dimension_numbers<[1], [1], [0], [0], [0, 0, 1, 0], [], []>} : vector<8x16xf32>, vector<8x16xf32>, vector<8x8xf32> -> vector<8x8xf32>
    %cst_11 = arith.constant 2.500000e-01 : f32
    %24 = vector.broadcast %cst_11 : f32 to vector<8x8xf32>
    %25 = arith.mulf %23, %24 : vector<8x8xf32>
    %cst_12 = arith.constant -3.40282347E+38 : f32
    %26 = vector.broadcast %cst_12 : f32 to vector<8x8xf32>
    %27 = arith.select %19, %25, %26 : vector<8x8xi1>, vector<8x8xf32>
    %c0_13 = arith.constant 0 : index
    %c0_14 = arith.constant 0 : index
    %c0_15 = arith.constant 0 : index
    %28 = vector.load %arg9[%c0_13, %c0_14, %c0_15] : memref<2x8x1xf32, #tpu.memory_space<vmem>>, vector<1x8x1xf32>
    %29 = vector.shape_cast %28 : vector<1x8x1xf32> to vector<8x1xf32>
    %cst_16 = arith.constant dense<0xFF800000> : vector<8xf32>
    %30 = vector.multi_reduction <maximumf>, %27, %cst_16 [1] : vector<8x8xf32> to vector<8xf32>
    %31 = vector.shape_cast %30 : vector<8xf32> to vector<8x1xf32>
    %32 = arith.maximumf %29, %31 : vector<8x1xf32>
    %33 = arith.subf %29, %32 : vector<8x1xf32>
    %34 = math.exp %33 : vector<8x1xf32>
    %35 = vector.broadcast %32 : vector<8x1xf32> to vector<8x8xf32>
    %36 = arith.subf %27, %35 : vector<8x8xf32>
    %37 = math.exp %36 : vector<8x8xf32>
    %c0_17 = arith.constant 0 : index
    %c0_18 = arith.constant 0 : index
    %c0_19 = arith.constant 0 : index
    %38 = vector.load %arg10[%c0_17, %c0_18, %c0_19] : memref<2x8x1xf32, #tpu.memory_space<vmem>>, vector<1x8x1xf32>
    %39 = vector.shape_cast %38 : vector<1x8x1xf32> to vector<8x1xf32>
    %40 = arith.mulf %34, %39 : vector<8x1xf32>
    %cst_20 = arith.constant dense<0.000000e+00> : vector<8xf32>
    %41 = vector.multi_reduction <add>, %37, %cst_20 [1] : vector<8x8xf32> to vector<8xf32>
    %42 = vector.shape_cast %41 : vector<8xf32> to vector<8x1xf32>
    %43 = arith.addf %40, %42 : vector<8x1xf32>
    %c0_21 = arith.constant 0 : index
    %c0_22 = arith.constant 0 : index
    %c0_23 = arith.constant 0 : index
    %44 = vector.load %arg10[%c0_21, %c0_22, %c0_23] : memref<2x8x1xf32, #tpu.memory_space<vmem>>, vector<1x8x1xf32>
    %45 = vector.shape_cast %44 : vector<1x8x1xf32> to vector<8x1xf32>
    %46 = vector.shape_cast %43 : vector<8x1xf32> to vector<1x8x1xf32>
    tpu.vector_store %arg10[%c0_21, %c0_22, %c0_23], %46 {strides = array<i32>} : memref<2x8x1xf32, #tpu.memory_space<vmem>>, vector<1x8x1xf32>,
    %c0_24 = arith.constant 0 : index
    %c0_25 = arith.constant 0 : index
    %c0_26 = arith.constant 0 : index
    %47 = vector.load %arg9[%c0_24, %c0_25, %c0_26] : memref<2x8x1xf32, #tpu.memory_space<vmem>>, vector<1x8x1xf32>
    %48 = vector.shape_cast %47 : vector<1x8x1xf32> to vector<8x1xf32>
    %49 = vector.shape_cast %32 : vector<8x1xf32> to vector<1x8x1xf32>
    tpu.vector_store %arg9[%c0_24, %c0_25, %c0_26], %49 {strides = array<i32>} : memref<2x8x1xf32, #tpu.memory_space<vmem>>, vector<1x8x1xf32>,
    %c0_27 = arith.constant 0 : index
    %c0_28 = arith.constant 0 : index
    %50 = vector.load %arg11[%c0_27, %c0_28] : memref<8x32xf32, #tpu.memory_space<vmem>>, vector<8x16xf32>
    %51 = vector.broadcast %34 : vector<8x1xf32> to vector<8x16xf32>
    %52 = arith.mulf %51, %50 : vector<8x16xf32>
    %cst_29 = arith.constant dense<0.000000e+00> : vector<8x16xf32>
    %53 = tpu.matmul %37, %22, %cst_29 {dimension_numbers = #tpu.dot_dimension_numbers<[1], [0], [0], [1], [0, 0, 1, 1], [], []>} : vector<8x8xf32>, vector<8x16xf32>, vector<8x16xf32> -> vector<8x16xf32>
    %54 = arith.addf %52, %53 : vector<8x16xf32>
    %c0_30 = arith.constant 0 : index
    %c0_31 = arith.constant 0 : index
    %55 = vector.load %arg11[%c0_30, %c0_31] : memref<8x32xf32, #tpu.memory_space<vmem>>, vector<8x16xf32>
    tpu.vector_store %arg11[%c0_30, %c0_31], %54 {strides = array<i32>} : memref<8x32xf32, #tpu.memory_space<vmem>>, vector<8x16xf32>,
    %56 = vector.extract_strided_slice %4 {offsets = [0, 16], sizes = [8, 16], strides = [1, 1]} : vector<8x32xf32> to vector<8x16xf32>
    %57 = vector.extract_strided_slice %6 {offsets = [0, 16], sizes = [8, 16], strides = [1, 1]} : vector<8x32xf32> to vector<8x16xf32>
    %58 = vector.extract_strided_slice %8 {offsets = [0, 16], sizes = [8, 16], strides = [1, 1]} : vector<8x32xf32> to vector<8x16xf32>
    %cst_32 = arith.constant dense<0.000000e+00> : vector<8x8xf32>
    %59 = tpu.matmul %56, %57, %cst_32 {dimension_numbers = #tpu.dot_dimension_numbers<[1], [1], [0], [0], [0, 0, 1, 0], [], []>} : vector<8x16xf32>, vector<8x16xf32>, vector<8x8xf32> -> vector<8x8xf32>
    %cst_33 = arith.constant 2.500000e-01 : f32
    %60 = vector.broadcast %cst_33 : f32 to vector<8x8xf32>
    %61 = arith.mulf %59, %60 : vector<8x8xf32>
    %cst_34 = arith.constant -3.40282347E+38 : f32
    %62 = vector.broadcast %cst_34 : f32 to vector<8x8xf32>
    %63 = arith.select %19, %61, %62 : vector<8x8xi1>, vector<8x8xf32>
    %c1 = arith.constant 1 : index
    %c0_35 = arith.constant 0 : index
    %c0_36 = arith.constant 0 : index
    %64 = vector.load %arg9[%c1, %c0_35, %c0_36] : memref<2x8x1xf32, #tpu.memory_space<vmem>>, vector<1x8x1xf32>
    %65 = vector.shape_cast %64 : vector<1x8x1xf32> to vector<8x1xf32>
    %cst_37 = arith.constant dense<0xFF800000> : vector<8xf32>
    %66 = vector.multi_reduction <maximumf>, %63, %cst_37 [1] : vector<8x8xf32> to vector<8xf32>
    %67 = vector.shape_cast %66 : vector<8xf32> to vector<8x1xf32>
    %68 = arith.maximumf %65, %67 : vector<8x1xf32>
    %69 = arith.subf %65, %68 : vector<8x1xf32>
    %70 = math.exp %69 : vector<8x1xf32>
    %71 = vector.broadcast %68 : vector<8x1xf32> to vector<8x8xf32>
    %72 = arith.subf %63, %71 : vector<8x8xf32>
    %73 = math.exp %72 : vector<8x8xf32>
    %c1_38 = arith.constant 1 : index
    %c0_39 = arith.constant 0 : index
    %c0_40 = arith.constant 0 : index
    %74 = vector.load %arg10[%c1_38, %c0_39, %c0_40] : memref<2x8x1xf32, #tpu.memory_space<vmem>>, vector<1x8x1xf32>
    %75 = vector.shape_cast %74 : vector<1x8x1xf32> to vector<8x1xf32>
    %76 = arith.mulf %70, %75 : vector<8x1xf32>
    %cst_41 = arith.constant dense<0.000000e+00> : vector<8xf32>
    %77 = vector.multi_reduction <add>, %73, %cst_41 [1] : vector<8x8xf32> to vector<8xf32>
    %78 = vector.shape_cast %77 : vector<8xf32> to vector<8x1xf32>
    %79 = arith.addf %76, %78 : vector<8x1xf32>
    %c1_42 = arith.constant 1 : index
    %c0_43 = arith.constant 0 : index
    %c0_44 = arith.constant 0 : index
    %80 = vector.load %arg10[%c1_42, %c0_43, %c0_44] : memref<2x8x1xf32, #tpu.memory_space<vmem>>, vector<1x8x1xf32>
    %81 = vector.shape_cast %80 : vector<1x8x1xf32> to vector<8x1xf32>
    %82 = vector.shape_cast %79 : vector<8x1xf32> to vector<1x8x1xf32>
    tpu.vector_store %arg10[%c1_42, %c0_43, %c0_44], %82 {strides = array<i32>} : memref<2x8x1xf32, #tpu.memory_space<vmem>>, vector<1x8x1xf32>,
    %c1_45 = arith.constant 1 : index
    %c0_46 = arith.constant 0 : index
    %c0_47 = arith.constant 0 : index
    %83 = vector.load %arg9[%c1_45, %c0_46, %c0_47] : memref<2x8x1xf32, #tpu.memory_space<vmem>>, vector<1x8x1xf32>
    %84 = vector.shape_cast %83 : vector<1x8x1xf32> to vector<8x1xf32>
    %85 = vector.shape_cast %68 : vector<8x1xf32> to vector<1x8x1xf32>
    tpu.vector_store %arg9[%c1_45, %c0_46, %c0_47], %85 {strides = array<i32>} : memref<2x8x1xf32, #tpu.memory_space<vmem>>, vector<1x8x1xf32>,
    %c0_48 = arith.constant 0 : index
    %c16 = arith.constant 16 : index
    %86 = vector.load %arg11[%c0_48, %c16] : memref<8x32xf32, #tpu.memory_space<vmem>>, vector<8x16xf32>
    %87 = vector.broadcast %70 : vector<8x1xf32> to vector<8x16xf32>
    %88 = arith.mulf %87, %86 : vector<8x16xf32>
    %cst_49 = arith.constant dense<0.000000e+00> : vector<8x16xf32>
    %89 = tpu.matmul %73, %58, %cst_49 {dimension_numbers = #tpu.dot_dimension_numbers<[1], [0], [0], [1], [0, 0, 1, 1], [], []>} : vector<8x8xf32>, vector<8x16xf32>, vector<8x16xf32> -> vector<8x16xf32>
    %90 = arith.addf %88, %89 : vector<8x16xf32>
    %c0_50 = arith.constant 0 : index
    %c16_51 = arith.constant 16 : index
    %91 = vector.load %arg11[%c0_50, %c16_51] : memref<8x32xf32, #tpu.memory_space<vmem>>, vector<8x16xf32>
    tpu.vector_store %arg11[%c0_50, %c16_51], %90 {strides = array<i32>} : memref<8x32xf32, #tpu.memory_space<vmem>>, vector<8x16xf32>,
    %c0_i32_52 = arith.constant 0 : i32
    %92 = arith.cmpi eq, %arg2, %c0_i32_52 : i32
    %93 = arith.extui %92 : i1 to i32
    %c0_i32_53 = arith.constant 0 : i32
    %94 = arith.cmpi ne, %93, %c0_i32_53 : i32
    scf.if %94 {
      %c0_54 = arith.constant 0 : index
      %c0_55 = arith.constant 0 : index
      %c0_56 = arith.constant 0 : index
      %95 = vector.load %arg10[%c0_54, %c0_55, %c0_56] : memref<2x8x1xf32, #tpu.memory_space<vmem>>, vector<1x8x1xf32>
      %96 = vector.shape_cast %95 : vector<1x8x1xf32> to vector<8x1xf32>
      %97 = tpu.reciprocal %96 {approx = true} : vector<8x1xf32> -> vector<8x1xf32>
      %98 = arith.mulf %96, %97 : vector<8x1xf32>
      %cst_57 = arith.constant 2.000000e+00 : f32
      %99 = vector.broadcast %cst_57 : f32 to vector<8x1xf32>
      %100 = arith.subf %99, %98 : vector<8x1xf32>
      %101 = arith.mulf %97, %100 : vector<8x1xf32>
      %c0_58 = arith.constant 0 : index
      %c0_59 = arith.constant 0 : index
      %102 = vector.load %arg11[%c0_58, %c0_59] : memref<8x32xf32, #tpu.memory_space<vmem>>, vector<8x16xf32>
      %103 = vector.broadcast %101 : vector<8x1xf32> to vector<8x16xf32>
      %104 = arith.mulf %102, %103 : vector<8x16xf32>
      %c0_60 = arith.constant 0 : index
      %c0_61 = arith.constant 0 : index
      %105 = vector.load %arg11[%c0_60, %c0_61] : memref<8x32xf32, #tpu.memory_space<vmem>>, vector<8x16xf32>
      tpu.vector_store %arg11[%c0_60, %c0_61], %104 {strides = array<i32>} : memref<8x32xf32, #tpu.memory_space<vmem>>, vector<8x16xf32>,
      %c1_62 = arith.constant 1 : index
      %c0_63 = arith.constant 0 : index
      %c0_64 = arith.constant 0 : index
      %106 = vector.load %arg10[%c1_62, %c0_63, %c0_64] : memref<2x8x1xf32, #tpu.memory_space<vmem>>, vector<1x8x1xf32>
      %107 = vector.shape_cast %106 : vector<1x8x1xf32> to vector<8x1xf32>
      %108 = tpu.reciprocal %107 {approx = true} : vector<8x1xf32> -> vector<8x1xf32>
      %109 = arith.mulf %107, %108 : vector<8x1xf32>
      %cst_65 = arith.constant 2.000000e+00 : f32
      %110 = vector.broadcast %cst_65 : f32 to vector<8x1xf32>
      %111 = arith.subf %110, %109 : vector<8x1xf32>
      %112 = arith.mulf %108, %111 : vector<8x1xf32>
      %c0_66 = arith.constant 0 : index
      %c16_67 = arith.constant 16 : index
      %113 = vector.load %arg11[%c0_66, %c16_67] : memref<8x32xf32, #tpu.memory_space<vmem>>, vector<8x16xf32>
      %114 = vector.broadcast %112 : vector<8x1xf32> to vector<8x16xf32>
      %115 = arith.mulf %113, %114 : vector<8x16xf32>
      %c0_68 = arith.constant 0 : index
      %c16_69 = arith.constant 16 : index
      %116 = vector.load %arg11[%c0_68, %c16_69] : memref<8x32xf32, #tpu.memory_space<vmem>>, vector<8x16xf32>
      tpu.vector_store %arg11[%c0_68, %c16_69], %115 {strides = array<i32>} : memref<8x32xf32, #tpu.memory_space<vmem>>, vector<8x16xf32>,
      %c0_70 = arith.constant 0 : index
      %c0_71 = arith.constant 0 : index
      %117 = vector.load %arg11[%c0_70, %c0_71] : memref<8x32xf32, #tpu.memory_space<vmem>>, vector<8x32xf32>
      %c0_72 = arith.constant 0 : index
      %c0_73 = arith.constant 0 : index
      %118 = vector.load %arg6[%c0_72, %c0_73] : memref<32x32xf32, #tpu.memory_space<vmem>>, vector<32x32xf32>
      %cst_74 = arith.constant dense<0.000000e+00> : vector<8x32xf32>
      %119 = tpu.matmul %117, %118, %cst_74 {dimension_numbers = #tpu.dot_dimension_numbers<[1], [0], [0], [1], [0, 0, 1, 1], [], []>} : vector<8x32xf32>, vector<32x32xf32>, vector<8x32xf32> -> vector<8x32xf32>
      %c0_75 = arith.constant 0 : index
      %c0_76 = arith.constant 0 : index
      %120 = vector.load %arg7[%c0_75, %c0_76] : memref<1x32xf32, #tpu.memory_space<vmem>>, vector<1x32xf32>
      %121 = vector.broadcast %120 : vector<1x32xf32> to vector<8x32xf32>
      %122 = arith.addf %119, %121 : vector<8x32xf32>
      %c0_77 = arith.constant 0 : index
      %c0_78 = arith.constant 0 : index
      %c0_79 = arith.constant 0 : index
      %123 = vector.load %arg8[%c0_77, %c0_78, %c0_79] : memref<1x8x32xf32, #tpu.memory_space<vmem>>, vector<1x8x32xf32>
      %124 = vector.shape_cast %123 : vector<1x8x32xf32> to vector<8x32xf32>
      %125 = vector.shape_cast %122 : vector<8x32xf32> to vector<1x8x32xf32>
      tpu.vector_store %arg8[%c0_77, %c0_78, %c0_79], %125 {strides = array<i32>} : memref<1x8x32xf32, #tpu.memory_space<vmem>>, vector<1x8x32xf32>,
    } else {
    }
    return
  }
  func.func @transform_0(%arg0: i32, %arg1: i32, %arg2: i32) -> (i32, i32, i32) {
    %c0_i32 = arith.constant 0 : i32
    %c0_i32_0 = arith.constant 0 : i32
    return %arg0, %arg1, %c0_i32 : i32, i32, i32
  }
  func.func @transform_1(%arg0: i32, %arg1: i32, %arg2: i32) -> (i32, i32, i32) {
    %c0_i32 = arith.constant 0 : i32
    %c0_i32_0 = arith.constant 0 : i32
    return %arg0, %arg2, %c0_i32 : i32, i32, i32
  }
  func.func @transform_2(%arg0: i32, %arg1: i32, %arg2: i32) -> (i32, i32, i32) {
    %c0_i32 = arith.constant 0 : i32
    %c0_i32_0 = arith.constant 0 : i32
    return %arg0, %arg2, %c0_i32 : i32, i32, i32
  }
  func.func @transform_3(%arg0: i32, %arg1: i32, %arg2: i32) -> (i32, i32) {
    %c0_i32 = arith.constant 0 : i32
    %c0_i32_0 = arith.constant 0 : i32
    %c0_i32_1 = arith.constant 0 : i32
    return %c0_i32, %c0_i32_0 : i32, i32
  }
  func.func @transform_4(%arg0: i32, %arg1: i32, %arg2: i32) -> (i32, i32) {
    %c0_i32 = arith.constant 0 : i32
    %c0_i32_0 = arith.constant 0 : i32
    %c0_i32_1 = arith.constant 0 : i32
    return %c0_i32, %c0_i32_0 : i32, i32
  }
  func.func @transform_5(%arg0: i32, %arg1: i32, %arg2: i32) -> (i32, i32, i32) {
    %c0_i32 = arith.constant 0 : i32
    %c0_i32_0 = arith.constant 0 : i32
    return %arg0, %arg1, %c0_i32 : i32, i32, i32
  }
}

</mosaic_0001>

<bundles_post_ra>
// kernel: tpu_custom_call.1
= control target key start
LH: loop header
LB: loop body
LE: loop exit
PB: predicated region body
PF: predicated region fallthrough
CT: control target
= control target key end

     0   :  { %s1403_s0 = inlined_call_operand.hbm [shape: f32[2,8,32], index: 0, kind: input, shape index: {}]   ;;  %s1404_s1 = inlined_call_operand.hbm [shape: f32[2,8,32], index: 1, kind: input, shape index: {}]   ;;  %s1405_s2 = inlined_call_operand.hbm [shape: f32[2,8,32], index: 2, kind: input, shape index: {}]   ;;  %s1406_s3 = inlined_call_operand.hbm [shape: f32[32,32], index: 3, kind: input, shape index: {}]   ;;  %s1407_s4 = inlined_call_operand.vmem [shape: f32[1,32], index: 4, kind: input, shape index: {}]   ;;  %s1408_s5 = inlined_call_operand.hbm [shape: f32[2,8,32], index: 5, kind: output, shape index: {}]  }
   0x1   :  { %1415 = sst [smem:[#allocation23_spill]] %s1404_s1 }
   0x2   :  { %1416 = sst [smem:[#allocation24_spill]] %s1406_s3 }
   0x3   :  { %10 = vsyncpa [#allocation6], 0 }
   0x4   :  { %12 = vsyncpa [#allocation6 + $0x1], 0 }
   0x5   :  { %13 = vsyncpa [#allocation9], 0 }
   0x6   :  { %15 = vsyncpa [#allocation9 + $0x1], 0 }
   0x7   :  { %16 = vsyncpa [#allocation12], 0 }
   0x8   :  { %17 = vsyncpa [#allocation7], 0 }
   0x9   :  { %19 = vsyncpa [#allocation7 + $0x1], 0  ;;  %s1175_s18 = smov 0   ;;  %s1177_s19 = smov 0  }
   0xa   :  { %s1179_s20 = smov 0   ;;  %s1181_s21 = smov 0  }
   0xb   :  { %s1183_s22 = smov 0   ;;  %s1185_s23 = smov 0  }
   0xc LB: > { %1417 = sst [smem:[#allocation18_spill]] %s1131_s22  ;;  %s1206_s24 = sadd.s32 4294967295, %s1135_s23   ;;  %s1135_s23 = sphi %s1185_s23, %s25_s23   ;;  %s1131_s22 = sphi %s1183_s22, %s1435_s22   ;;  %s1127_s21 = sphi %s1181_s21, %s1434_s21   ;;  %s1123_s20 = sphi %s1179_s20, %s1438_s20   ;;  %s1119_s19 = sphi %s1177_s19, %s1437_s19   ;;  %s1115_s18 = sphi %s1175_s18, %s1436_s18  }
   0xd   : > { %1418 = sst [smem:[#allocation19_spill]] %s1135_s23  ;;  %s792_s25 = sadd.s32 4294967294, %s1135_s23  }
   0xe   : > { %s44_s26 = sadd.s32 1, %s1131_s22  ;;  %s53_s27 = sadd.s32 1, %s1123_s20 }
   0xf   : > { %p46_p0 = scmp.ge.s32.totalorder %s44_s26, 2  ;;  %p60_p1 = scmp.ne.s32.totalorder %s1123_s20, %s1119_s19 }
  0x10   : > { %p61_p2 = scmp.eq.s32.totalorder %s1135_s23, 0  ;;  %p66_p3 = scmp.ne.s32.totalorder %s1119_s19, %s1115_s18 }
  0x11   : > { %s1440_s26 = smov (%p46_p0, %s44_s26), 0  ;;  %p190_p5 = scmp.eq.s32.totalorder %s1206_s24, 1 }
  0x12   : > { %1419 = sst [smem:[#allocation20_spill]] %s1440_s26  ;;  %p1218_p4 = por %p61_p2, %p60_p1 }
  0x13   : > { %s48_s29 = ssub.s32 %s1131_s22, %s1440_s26  ;;  %p196_p6 = scmp.eq.s32.totalorder %s792_s25, 1 }
  0x14   : > { %p51_p7 = scmp.eq.s32.totalorder %s48_s29, 0  ;;  %p1225_p8 = por %p190_p5, %p60_p1 }
  0x15   : > { %p1232_p9 = por %p196_p6, %p66_p3  ;;  %p795_p10 = scmp.ge.s32.totalorder %s1135_s23, 2 }
  0x16   : > { %s1237_s7 = scalar_select %p51_p7, %s1123_s20, %s53_s27  }
  0x17   : > { %s1422_s6 = scalar_select %p1232_p9, 1, 0 }
  0x18   : > { %1424 = sst [smem:[#allocation22_spill]] %s1237_s7  ;;  %p850_p11 = scmp.lt.s32.totalorder %s1135_s23, 2 }
  0x19   : > { %1423 = sst [smem:[#allocation21_spill]] %s1422_s6  ;;  %s1409_s8 = sand.u32 1, %s1123_s20  }
  0x1a   : > { %s1243_s9 = sshll.u32 %s1131_s22, 3  ;;  %s1247_s10 = sshll.u32 %s1409_s8, 3 }
  0x1b   : > { %p1251_p12 = pnand %p850_p11, %p1218_p4  ;;  %s253_s12 = sand.u32 1, %s1135_s23  }
  0x1c   : > { %s1426_s1 = sld [smem:[#allocation23_spill]]  ;;  %s257_s16 = scalar_lea.vmem [#allocation8], %s1247_s10 }
  0x1d   : > { %s266_s17 = sshll.u32 %s257_s16, 4  ;;  %s1261_s27 = scalar_lea.sflag [#allocation9], %s253_s12  ;;  %s267_s17 = int_to_ptr.vmem [resolvable:$true] %s266_s17 }
  0x1e   : > { %p67_p13 = scmp.eq.s32.totalorder %s1206_s24, 0  ;;  %p793_p0 = scmp.ge.s32.totalorder %s1135_s23, 1 }
  0x1f   : > { %p203_p1 = scmp.lt.s32.totalorder %s1135_s23, 3  ;;  %s1428_s3 = sld [smem:[#allocation24_spill]] }
  0x20   : > { %p1274_p2 = por %p67_p13, %p66_p3  ;;  %s242_s29 = scalar_lea.hbm %s1403_s0, %s1243_s9 }
  0x21   : > { %p1281_p4 = pnand %p793_p0, %p203_p1  ;;  %s244_s13 = sshll.u32 %s242_s29, 4  ;;  %s245_s13 = int_to_ptr.hbm [resolvable:$true] %s244_s13 }
  0x22   : > { %s262_s15 = scalar_lea.hbm %s1426_s1, %s1243_s9  ;;  %s1138_s8 = smov 128  }
  0x23   : > { %s264_s25 = sshll.u32 %s262_s15, 4  ;;  %p831_p5 = pneg %p1281_p4  ;;  %s265_s25 = int_to_ptr.hbm [resolvable:$true] %s264_s25 }
  0x24   : > { %841 = dma.hbm_to_vmem [thread:$0]  (!%p1251_p12), %s265_s25, 128, %s267_s17, %s1261_s27  }
  0x25   : > { %s214_s14 = sshll.u32 %s1428_s3, 4  ;;  %s1137_s15 = smov [#allocation11]   ;;  %s215_s14 = int_to_ptr.hbm [resolvable:$true] %s214_s14 }
  0x26   : > { %s216_s16 = sshll.u32 %s1137_s15, 4  ;;  %p832_p3 = pnand %p831_p5, %p67_p13  ;;  %s217_s16 = int_to_ptr.vmem [resolvable:$true] %s216_s16 }
  0x27   : > { %s1139_s1 = smov 8   ;;  %s237_s3 = scalar_lea.vmem [#allocation5], %s1247_s10 }
  0x28   : > { %834 = dma.hbm_to_vmem [thread:$0]  (!%p832_p3), %s215_s14, 512, %s217_s16, [#allocation12], %s1138_s8, %s1138_s8, %s1139_s1  }
  0x29   : > { %s246_s26 = sshll.u32 %s237_s3, 4  ;;  %s1430_s22 = sand.u32 1, %s1123_s20   ;;  %s247_s26 = int_to_ptr.vmem [resolvable:$true] %s246_s26 }
  0x2a   : > { %s234_s7 = scalar_lea.sflag [#allocation6], %s1430_s22  ;;  %s282_s6 = scalar_lea.hbm %s1405_s2, %s1243_s9 }
  0x2b   : > { %838 = dma.hbm_to_vmem [thread:$0]  (!%p1251_p12), %s245_s13, 128, %s247_s26, %s234_s7  }
  0x2c   : > { %s277_s17 = scalar_lea.vmem [#allocation10], %s1247_s10  ;;  %s284_s29 = sshll.u32 %s282_s6, 4  ;;  %s285_s29 = int_to_ptr.hbm [resolvable:$true] %s284_s29 }
  0x2d   : > { %s286_s25 = sshll.u32 %s277_s17, 4  ;;  %295 = sbr.rel (%p1281_p4) target bundleno = 974 (0x3ce), region = 40  ;;  %s287_s25 = int_to_ptr.vmem [resolvable:$true] %s286_s25 }
  0x2e   : > { %844 = dma.hbm_to_vmem [thread:$0]  (!%p1251_p12), %s285_s29, 128, %s287_s25, %s1261_s27  }
  0x2f   : > { %s1309_s1 = sand.u32 (!%p1281_p4), 1, %s1119_s19  }
  0x30   : > { %s1312_s3 = sshll.u32 (!%p1281_p4), %s1309_s1, 3  ;;  %s298_s22 = scalar_lea.sflag (!%p1281_p4), [#allocation6], %s1309_s1 }
  0x31   : > { %s301_s23 = scalar_lea.vmem (!%p1281_p4), [#allocation5], %s1312_s3 }
  0x32   : > { %1098 = dma.done.wait (%p1274_p2), %s298_s22, 128  }
  0x33   : > { %1100 = vsyncadd (%p1274_p2), %s298_s22, 4294967168  ;;  %s307_s26 = sand.u32 1, %s1206_s24   ;;  %s311_s7 = scalar_lea.vmem [#allocation8], %s1312_s3 }
  0x34   : > { %s308_s6 = scalar_lea.sflag [#allocation9], %s307_s26 }
  0x35   : > { %1102 = dma.done.wait (%p1274_p2), %s308_s6, 256  }
  0x36   : > { %1104 = vsyncadd (%p1274_p2), %s308_s6, 4294967040  ;;  %s321_s8 = scalar_lea.vmem [#allocation10], %s1312_s3 }
  0x37   : > { %1106 = dma.done.wait (%p67_p13), [#allocation12], 512  }
  0x38   : > { %1108 = vsyncadd (%p67_p13), [#allocation12], 4294966784  ;;  %v376_v0 = vld [vmem:[%s311_s7] sm:$0xff]  ;;  %s1140_s9 = smov 112   ;;  %v375_v1 = vld [vmem:[%s301_s23] sm:$0xff]  ;;  %vm389_vm0 = vcmask 130048   ;;  %v378_v5 = vlaneseq }
  0x39   : > { %478 = vrot.lane.b32.xlu0 %v376_v0, %s1140_s9  ;;  %808 = vmatpush.xpose.msk.msra.mxu0 %vm389_vm0, %v376_v0  ;;  %vm368_vm1 = vcmask 7168   ;;  %v1141_v4 = vmov -inf   ;;  %vm419_vm3 = vcmask 64512   ;;  %v1142_v16 = vmov 0   ;;  %v377_v18 = vld [vmem:[%s321_s8] sm:$0xff]  ;;  %s1144_s24 = smov 16  }
  0x3a   : > { %370 = vst.msk [vmem:[#allocation2 + $0x8] sm:$0xff] %vm368_vm1, %v1141_v4  ;;  %v379_v6 = vshrl.u32 %v378_v5, 7  ;;  %v384_v7 = vand.u32 127, %v378_v5  ;;  %909 = vset.pattern.permute.xlu2 %v1142_v16  ;;  %910 = vset.pattern.permute.xlu0 %v1142_v16  ;;  %v1143_v17 = vmov 0.0   ;;  %vm373_vm4 = vcmask 261120   ;;  %s816_s10 = sshll.u32 %s1127_s21, 3 }
  0x3b   : > { %369 = vst.msk [vmem:[#allocation2] sm:$0xff] %vm368_vm1, %v1141_v4  ;;  %911 = vset.pattern.permute.xlu1 %v1142_v16  ;;  %469 = vmatpush.msra.mxu1 %v377_v18  ;;  %vm571_vm5 = vcmask 261248   ;;  %s648_s28 = scalar_lea.hbm %s1408_s5, %s816_s10  ;;  %s363_s16 = scalar_lea.vmem [#allocation13], %s1312_s3 }
  0x3c   : > { %809 = vmatmul.msk.f32.vlgmr.msra.gmra.mxu0 %vm389_vm0, %v375_v1  ;;  %vm388_vm2 = vcmp.le.s32.totalorder %v384_v7, %v379_v6  ;;  %372 = vst.msk [vmem:[#allocation3 + $0x8] sm:$0xff] %vm368_vm1, %v1143_v17  ;;  %v606_v7 = vld [vmem:[#allocation11 + $0x18] sm:$0xff]  ;;  %s650_s13 = sshll.u32 %s363_s16, 4  ;;  %s652_s15 = sshll.u32 %s648_s28, 4  ;;  %s651_s13 = int_to_ptr.vmem [resolvable:$true] %s650_s13  ;;  %s653_s15 = int_to_ptr.hbm [resolvable:$true] %s652_s15 }
  0x3d   : > { %371 = vst.msk [vmem:[#allocation3] sm:$0xff] %vm368_vm1, %v1143_v17  ;;  %627 = vmatpush.msrb.mxu1 %v606_v7  ;;  %s637_s17 = scalar_lea.sflag [#allocation7], %s1309_s1  ;;  %s1059_s21 = sshra.s32 %s653_s15, 4  ;;  %s1060_s21 = int_to_ptr.hbm [resolvable:$true] %s1059_s21 }
  0x3e   : > { %374 = vst.msk [vmem:[#allocation4] sm:$0xff] %vm373_vm4, %v1143_v17  ;;  %s1061_s25 = scalar_lea.hbm %s1060_s21, 8  ;;  %s1065_s3 = scalar_lea.hbm %s1408_s5, 16 }
  0x3f   : > { %p1062_p6 = scmp.ne.s32.totalorder %s1060_s21, %s1061_s25  ;;  %p1066_p12 = scmp.lt.s32.totalorder %s1060_s21, %s1408_s5 }
  0x40   : > { %p1067_p13 = scmp.lt.s32.totalorder %s1065_s3, %s1061_s25 }
  0x41   : > { %476 = vrot.lane.b32.xlu0 %v375_v1, %s1140_s9  ;;  %v507_v19 = vld [vmem:[#allocation2 + $0x8] sm:$0xff]  ;;  %p1063_p7 = pnand %p1062_p6, %p1225_p8 }
  0x42   : > { %v418_v23 = vld [vmem:[#allocation2] sm:$0xff]  ;;  %p1068_p0 = por %p1067_p13, %p1066_p12 }
  0x43   : > { %v524_v42 = vld [vmem:[#allocation3 + $0x8] sm:$0xff]  ;;  %p1064_p11 = pneg %p1063_p7 }
  0x44   : > { %v435_v52 = vld [vmem:[#allocation3] sm:$0xff] }
  0x45   : > { %v444_v60 = vld [vmem:[#allocation4] sm:$0xff]  ;;  %p1069_p1 = pnand %p1068_p0, %p1064_p11 }
  0xab   : > { %v479_v2 = vpop.permute.xlu0 %478 }
  0xac   : > { %811 = vmatpush.xpose.msk.msra.mxu2 %vm389_vm0, %v479_v2 }
  0xb3   : > { %v477_v3 = vpop.permute.xlu0 %476 }
  0xb4   : > { %812 = vmatmul.msk.f32.vlgmr.msra.gmra.mxu2 %vm389_vm0, %v477_v3 }
  0xb9   : > { %v413_v9 = vpop.f32.mrf.mxu0 }
  0xba   : > { %v416_v12 = vmul.f32 0.25, %v413_v9  ;;  %v604_v9 = vld [vmem:[#allocation11 + $0x8] sm:$0xff] }
  0xbc   : > { %v417_v14 = vsel %vm388_vm2, %v416_v12, -3.4028235e+38 }
  0xbd   : > { %v420_v15 = vsel %vm419_vm3, %v417_v14, -inf }
 0x137   : > { %v501_v8 = vpop.f32.mrf.mxu2 }
 0x138   : > { %v504_v10 = vmul.f32 0.25, %v501_v8  ;;  %v605_v8 = vld [vmem:[#allocation11 + $0x10] sm:$0xff] }
 0x139   : > { %628 = vmatpush.msrb.mxu1 %v605_v8 }
 0x13a   : > { %v505_v11 = vsel %vm388_vm2, %v504_v10, -3.4028235e+38  ;;  %v603_v10 = vld [vmem:[#allocation11] sm:$0xff] }
 0x13b   : > { %v508_v13 = vsel %vm419_vm3, %v505_v11, -inf  ;;  %629 = vmatpush.msrb.mxu1 %v604_v9 }
 0x13c   : > { %509 = vmax.xlane.f32.xlu1 %v508_v13 }
 0x13d   : > { %630 = vmatpush.msrb.mxu1 %v603_v10 }
 0x144   : > { %421 = vmax.xlane.f32.xlu1 %v420_v15 }
 0x1af   : > { %v510_v20 = vpop.xlane.xlu1 %509 }
 0x1b0   : > { %v511_v21 = vmax.f32 %v507_v19, %v510_v20 }
 0x1b2   : > { %531 = vst.msk [vmem:[#allocation2 + $0x8] sm:$0xff] %vm368_vm1, %v511_v21  ;;  %517 = vperm.xlu2 %909, %v511_v21   ;;  %v512_v22 = vsub.f32 %v507_v19, %v511_v21 }
 0x1b4   : > { %v513_v24 = vmul.f32 1.442695, %v512_v22 }
 0x1b6   : > { %913 = vpow2.f32 %v513_v24 }
 0x1b7   : > { %v422_v25 = vpop.xlane.xlu1 %421 }
 0x1b8   : > { %v423_v26 = vmax.f32 %v418_v23, %v422_v25 }
 0x1ba   : > { %v424_v27 = vsub.f32 %v418_v23, %v423_v26  ;;  %443 = vst.msk [vmem:[#allocation2] sm:$0xff] %vm368_vm1, %v423_v26  ;;  %429 = vperm.xlu0 %910, %v423_v26   ;;  %540 = vrot.lane.b32.xlu2 %v377_v18, %s1140_s9  ;;  %v912_v18 = vld [vmem:[%s1407_s4] ss:$0 sm:$0xff] }
 0x1bc   : > { %v914_v28 = vpop.eup %913  ;;  %v425_v40 = vmul.f32 1.442695, %v424_v27 }
 0x1bd   : > { %v525_v43 = vmul.f32 %v914_v28, %v524_v42 }
 0x1c2   : > { %535 = vperm.xlu0 %910, %v914_v28  }
 0x20c   : > { %v518_v29 = vpop.permute.xlu2 %517 }
 0x20d   : > { %v520_v30 = vsub.f32 %v505_v11, %v518_v29 }
 0x20f   : > { %v521_v31 = vmul.f32 1.442695, %v520_v30 }
 0x211   : > { %915 = vpow2.f32 %v521_v31 }
 0x214   : > { %v541_v32 = vpop.permute.xlu2 %540 }
 0x215   : > { %561 = vmatpush.msra.mxu3 %v541_v32 }
 0x217   : > { %v916_v33 = vpop.eup %915 }
 0x218   : > { %813 = vmatmul.msk.f32.vlgmr.msra.gmra.mxu3 %vm419_vm3, %v916_v33  ;;  %v526_v34 = vsel %vm419_vm3, %v916_v33, 0.0 }
 0x219   : > { %527 = vadd.xlane.f32.xlu2 %v526_v34 }
 0x22c   : > { %v430_v35 = vpop.permute.xlu0 %429 }
 0x22d   : > { %v432_v36 = vsub.f32 %v417_v14, %v430_v35 }
 0x22f   : > { %v433_v37 = vmul.f32 1.442695, %v432_v36 }
 0x231   : > { %917 = vpow2.f32 %v433_v37 }
 0x232   : > { %919 = vpow2.f32 %v425_v40 }
 0x234   : > { %v536_v2 = vpop.permute.xlu0 %535 }
 0x237   : > { %v918_v38 = vpop.eup %917 }
 0x238   : > { %810 = vmatmul.msk.f32.vlgmr.msra.gmra.mxu1 %vm419_vm3, %v918_v38  ;;  %v437_v39 = vsel %vm419_vm3, %v918_v38, 0.0  ;;  %v920_v41 = vpop.eup %919 }
 0x239   : > { %438 = vadd.xlane.f32.xlu1 %v437_v39  ;;  %v436_v53 = vmul.f32 %v920_v41, %v435_v52 }
 0x252   : > { %447 = vperm.xlu1 %911, %v920_v41  }
 0x28c   : > { %v528_v44 = vpop.xlane.xlu2 %527 }
 0x28d   : > { %v529_v45 = vadd.f32 %v528_v44, %v525_v43 }
 0x28f   : > { %530 = vst.msk [vmem:[#allocation3 + $0x8] sm:$0xff] %vm368_vm1, %v529_v45 }
 0x296   : > { %v589_v46 = vld [vmem:[#allocation3 + $0x8] sm:$0xff] }
 0x297   : > { %921 = vrcp.f32 %v589_v46 }
 0x29b   : > { %v563_v47 = vpop.f32.mrf.mxu3 }
 0x29c   : > { %567 = vrot.lane.b32.xlu0 %v563_v47, %s1144_s24 }
 0x29d   : > { %v922_v48 = vpop.eup %921 }
 0x29e   : > { %v591_v49 = vmul.f32 %v922_v48, %v589_v46 }
 0x2a0   : > { %v592_v50 = vsub.f32 2.0, %v591_v49 }
 0x2a2   : > { %v593_v51 = vmul.f32 %v922_v48, %v592_v50 }
 0x2a4   : > { %597 = vperm.xlu1 %911, %v593_v51  }
 0x2ac   : > { %v439_v54 = vpop.xlane.xlu1 %438 }
 0x2ad   : > { %v440_v55 = vadd.f32 %v439_v54, %v436_v53 }
 0x2af   : > { %442 = vst.msk [vmem:[#allocation3] sm:$0xff] %vm368_vm1, %v440_v55 }
 0x2b5   : > { %v471_v0 = vpop.f32.mrf.mxu1 }
 0x2b6   : > { %v576_v56 = vld [vmem:[#allocation3] sm:$0xff] }
 0x2b7   : > { %923 = vrcp.f32 %v576_v56 }
 0x2bd   : > { %v924_v57 = vpop.eup %923 }
 0x2be   : > { %v578_v58 = vmul.f32 %v924_v57, %v576_v56 }
 0x2c0   : > { %v579_v59 = vsub.f32 2.0, %v578_v58 }
 0x2c2   : > { %v580_v61 = vmul.f32 %v924_v57, %v579_v59 }
 0x2c4   : > { %v448_v62 = vpop.permute.xlu1 %447  ;;  %584 = vperm.xlu0 %910, %v580_v61  }
 0x2c5   : > { %v450_v63 = vmul.f32 %v448_v62, %v444_v60 }
 0x2c7   : > { %v474_v1 = vadd.f32 %v471_v0, %v450_v63 }
 0x2c9   : > { %475 = vst.msk [vmem:[#allocation4] sm:$0xff] %vm389_vm0, %v474_v1 }
 0x2d0   : > { %v532_v3 = vld [vmem:[#allocation4] sm:$0xff] }
 0x2d1   : > { %v538_v4 = vmul.f32 %v536_v2, %v532_v3 }
 0x30e   : > { %v568_v5 = vpop.permute.xlu0 %567 }
 0x30f   : > { %v570_v6 = vadd.f32 %v568_v5, %v538_v4 }
 0x311   : > { %572 = vst.msk [vmem:[#allocation4] sm:$0xff] %vm571_vm5, %v570_v6 }
 0x316   : > { %v598_v14 = vpop.permute.xlu1 %597 }
 0x318   : > { %v581_v11 = vld [vmem:[#allocation4] sm:$0xff] }
 0x336   : > { %v585_v12 = vpop.permute.xlu0 %584 }
 0x337   : > { %v587_v13 = vmul.f32 %v585_v12, %v581_v11 }
 0x339   : > { %588 = vst.msk [vmem:[#allocation4] sm:$0xff] %vm389_vm0, %v587_v13 }
 0x340   : > { %v594_v15 = vld [vmem:[#allocation4] sm:$0xff] }
 0x341   : > { %v600_v16 = vmul.f32 %v598_v14, %v594_v15 }
 0x343   : > { %601 = vst.msk [vmem:[#allocation4] sm:$0xff] %vm571_vm5, %v600_v16 }
 0x34a   : > { %v602_v17 = vld [vmem:[#allocation4] sm:$0xff] }
 0x34b   : > { %814 = vmatmul.msk.f32.vlgmr.msrb.gmra.mxu1 %vm373_vm4, %v602_v17 }
 0x3c8   : > { %v632_v19 = vpop.f32.mrf.mxu1 }
 0x3c9   : > { %v633_v20 = vadd.f32 %v912_v18, %v632_v19 }
 0x3cb   : > { %635 = vst.msk [vmem:[%s363_s16] sm:$0xff] %vm373_vm4, %v633_v20 }
 0x3cc   : > { %1072 = shalt.err (!%p1069_p1)
}
 0x3cd   : > { %829 = dma.vmem_to_hbm [thread:$0]  (%p1225_p8), %s651_s13, 128, %s653_s15, %s637_s17  }
 0x3ce PF: > { %s1432_s6 = sld [smem:[#allocation19_spill]]  ;;  %s664_s7 = sand.u32 1, %s1115_s18  }
 0x3cf   : > { %p846_p2 = pnand %p795_p10, %p1232_p9  ;;  %s665_s8 = scalar_lea.sflag [#allocation7], %s664_s7 }
 0x3d1   : > { %p847_p4 = pneg %p846_p2 }
 0x3d3   : > { %1110 = dma.done.wait (%p847_p4), %s665_s8, 128  }
 0x3d4   : > { %1112 = vsyncadd (%p847_p4), %s665_s8, 4294967168  ;;  %s25_s23 = sadd.s32 1, %s1432_s6   ;;  %s1433_s9 = sld [smem:[#allocation22_spill]] }
 0x3d5   : > { %p22_p5 = scmp.ge.s32.totalorder %s25_s23, 4   ;;  %s1434_s21 = sld [smem:[#allocation18_spill]] }
 0x3d6   : > { %s1435_s22 = sld [smem:[#allocation20_spill]]  ;;  %s1436_s18 = smov %s1119_s19 }
 0x3d7   : > { %s1437_s19 = smov %s1123_s20  ;;  %24 = sbr.rel (!%p22_p5) target bundleno = 12 (0xc), region = 123 }
 0x3da   : > { %s1438_s20 = smov %s1433_s9 }
 0x3dc   :  { %671 = vsyncpa [#allocation6], 1 }
 0x3dd   :  { %673 = vsyncpa [#allocation6 + $0x1], 1 }
 0x3de   :  { %674 = vsyncpa [#allocation9], 1 }
 0x3df   :  { %676 = vsyncpa [#allocation9 + $0x1], 1 }
 0x3e0   :  { %677 = vsyncpa [#allocation12], 1 }
 0x3e1   :  { %678 = vsyncpa [#allocation7], 1 }
 0x3e2   :  { %680 = vsyncpa [#allocation7 + $0x1], 1 }

</bundles_post_ra>
